<compile_context>
chip_gen: v7x
topology: tpu7x:2x2x1
jax: 0.10.0
libtpu: 0.0.40
codegen_flags: <defaults>
</compile_context>

<pallas_src>
import jax
import jax.numpy as jnp
from jax.experimental import pallas as pl
from jax.experimental.pallas import tpu as pltpu


def _round_up(x, m):
    return ((x + m - 1) // m) * m


# ------------------------------- kernel body --------------------------------

def actor_kernel(x_ref, w1_ref, b1_ref, w2_ref, b2_ref, wh_ref, bh_ref, out_ref):
    # fc1 + relu  (bf16 x bf16 -> f32 accumulation on the MXU)
    h1 = jnp.dot(x_ref[...], w1_ref[...], preferred_element_type=jnp.float32)
    h1 = jnp.maximum(h1 + b1_ref[...], 0.0).astype(jnp.bfloat16)
    # fc2 + relu
    h2 = jnp.dot(h1, w2_ref[...], preferred_element_type=jnp.float32)
    h2 = jnp.maximum(h2 + b2_ref[...], 0.0).astype(jnp.bfloat16)
    # fused heads: [B, 2*dim_action]  (mean | log_std)
    heads = jnp.dot(h2, wh_ref[...], preferred_element_type=jnp.float32)
    out_ref[...] = (heads + bh_ref[...]).astype(out_ref.dtype)


# ------------------------------ host wrappers --------------------------------

def prepare_actor_params(params):
    """One-time preprocessing (at init / per weight update, NOT per call):
    cast weights to bf16 and fuse the two head linears into one matmul."""
    return {
        "w1": params["w1"].astype(jnp.bfloat16),
        "b1": params["b1"].astype(jnp.float32),
        "w2": params["w2"].astype(jnp.bfloat16),
        "b2": params["b2"].astype(jnp.float32),
        "wh": jnp.concatenate([params["wm"], params["wl"]], axis=1).astype(jnp.bfloat16),
        "bh": jnp.concatenate([params["bm"], params["bl"]], axis=1).astype(jnp.float32),
    }


def _choose_batch_tiling(B):
    """Pick (tile_b, b_pad).  Rules:
      * small batch  -> single tile equal to the (8-padded) batch,
      * mid batch    -> 2 tiles so the batch axis can split across v7x's 2 TCs,
      * large batch  -> biggest tile <= 512 rows that minimizes padding."""
    b8 = _round_up(B, 8)
    if b8 <= 256:
        return b8, b8
    if b8 <= 1024:
        tile = _round_up((b8 + 1) // 2, 8)
        return tile, 2 * tile
    best_tile, best_pad = 512, _round_up(b8, 512) - B
    for t in (384, 256, 128):
        pad = _round_up(b8, t) - B
        if pad < best_pad:
            best_tile, best_pad = t, pad
    return best_tile, _round_up(b8, best_tile)


@jax.jit
def actor_forward(states, prep):
    """states: [B, dim_state] f32.  prep: output of prepare_actor_params."""
    B, dim_state = states.shape
    w1, b1 = prep["w1"], prep["b1"]
    w2, b2 = prep["w2"], prep["b2"]
    wh, bh = prep["wh"], prep["bh"]
    dim_action = wh.shape[1] // 2

    tile_b, b_pad = _choose_batch_tiling(B)
    x = states.astype(jnp.bfloat16)
    if b_pad != B:
        x = jnp.pad(x, ((0, b_pad - B), (0, 0)))
    grid = (b_pad // tile_b,)

    # Constant index_map -> weights/biases stay VMEM-resident across grid steps.
    const = lambda arr: pl.BlockSpec(arr.shape, lambda i: (0, 0))

    out = pl.pallas_call(
        actor_kernel,
        out_shape=jax.ShapeDtypeStruct((b_pad, 2 * dim_action), jnp.float32),
        grid=grid,
        in_specs=[
            pl.BlockSpec((tile_b, dim_state), lambda i: (i, 0)),  # x (batch-tiled)
            const(w1), const(b1),                                  # fc1
            const(w2), const(b2),                                  # fc2
            const(wh), const(bh),                                  # fused heads
        ],
        out_specs=pl.BlockSpec((tile_b, 2 * dim_action), lambda i: (i, 0)),
        compiler_params=pltpu.CompilerParams(
            dimension_semantics=("parallel",)),
    )(x, w1, b1, w2, b2, wh, bh)

    mean = out[:B, :dim_action]
    log_std = out[:B, dim_action:]
    return mean, log_std


# ----------------------------- parameter init --------------------------------

def fanin_init(key, shape):
    # PyTorch fanin_init: uniform(-1/sqrt(fan_in), 1/sqrt(fan_in)), weight [out, in]
    fan_in = shape[1]
    bound = 1.0 / jnp.sqrt(jnp.float32(fan_in))
    return jax.random.uniform(key, shape, jnp.float32, -bound, bound)


def linear_bias_init(key, fan_in, out_features):
    # PyTorch nn.Linear default bias init: uniform(-1/sqrt(fan_in), 1/sqrt(fan_in))
    bound = 1.0 / jnp.sqrt(jnp.float32(fan_in))
    return jax.random.uniform(key, (1, out_features), jnp.float32, -bound, bound)


def make_actor_params(key, dim_state, dim_action, h1=512, h2=512, init_w=3e-3):
    keys = jax.random.split(key, 8)
    # Weights created in PyTorch convention [out, in], then transposed to [in, out].
    w1 = fanin_init(keys[0], (h1, dim_state)).T
    b1 = linear_bias_init(keys[1], dim_state, h1)
    w2 = fanin_init(keys[2], (h2, h1)).T
    b2 = linear_bias_init(keys[3], h1, h2)
    wm = jax.random.uniform(keys[4], (dim_action, h2), jnp.float32, -init_w, init_w).T
    bm = linear_bias_init(keys[5], h2, dim_action)
    wl = jax.random.uniform(keys[6], (dim_action, h2), jnp.float32, -init_w, init_w).T
    bl = linear_bias_init(keys[7], h2, dim_action)
    return {"w1": w1, "b1": b1, "w2": w2, "b2": b2,
            "wm": wm, "bm": bm, "wl": wl, "bl": bl}


def actor_ref(states, p):
    # Pure-JAX f32 reference (matches the PyTorch module's forward).
    h1 = jnp.maximum(states @ p["w1"] + p["b1"], 0.0)
    h2 = jnp.maximum(h1 @ p["w2"] + p["b2"], 0.0)
    return h2 @ p["wm"] + p["bm"], h2 @ p["wl"] + p["bl"]


if __name__ == "__main__":
    key = jax.random.PRNGKey(0)
    k_param, k_s1, k_s2, k_s3 = jax.random.split(key, 4)

    dim_state, dim_action = 16, 4
    params = make_actor_params(k_param, dim_state, dim_action)
    prep = jax.block_until_ready(prepare_actor_params(params))  # one-time prep

    ok = True
    # B=2: tiny single tile; B=37: padded single tile; B=300: 2-tile grid
    # (exercises the megacore / multi-step pipeline path).
    for k, B in ((k_s1, 2), (k_s2, 37), (k_s3, 300)):
        states = jax.random.normal(k, (B, dim_state), jnp.float32)
        mean, log_std = actor_forward(states, prep)
        jax.block_until_ready((mean, log_std))
        mean_r, log_std_r = actor_ref(states, params)
        # bf16 weight/activation streaming -> relaxed tolerance vs f32 reference.
        ok &= bool(jnp.allclose(mean, mean_r, atol=1e-2, rtol=1e-2))
        ok &= bool(jnp.allclose(log_std, log_std_r, atol=1e-2, rtol=1e-2))

    assert ok
    print("KERNEL_OK")
</pallas_src>

<mosaic_0001>
module attributes {stable_mosaic.version = 11 : i64} {
  func.func @actor_kernel(%arg0: i32, %arg1: memref<8x16xbf16, #tpu.memory_space<vmem>>, %arg2: memref<16x512xbf16, #tpu.memory_space<vmem>>, %arg3: memref<1x512xf32, #tpu.memory_space<vmem>>, %arg4: memref<512x512xbf16, #tpu.memory_space<vmem>>, %arg5: memref<1x512xf32, #tpu.memory_space<vmem>>, %arg6: memref<512x8xbf16, #tpu.memory_space<vmem>>, %arg7: memref<1x8xf32, #tpu.memory_space<vmem>>, %arg8: memref<8x8xf32, #tpu.memory_space<vmem>>) attributes {dimension_semantics = [#tpu.dimension_semantics<parallel>], iteration_bounds = array<i64: 1>, scalar_prefetch = 0 : i64, scratch_operands = 0 : i64, tpu.core_type = #tpu.core_type<tc>, window_params = [{transform_indices = @transform_0, window_bounds = array<i64: 8, 16>}, {pipeline_mode = #tpu.pipeline_mode<synchronous>, transform_indices = @transform_1, window_bounds = array<i64: 16, 512>}, {pipeline_mode = #tpu.pipeline_mode<synchronous>, transform_indices = @transform_2, window_bounds = array<i64: 1, 512>}, {pipeline_mode = #tpu.pipeline_mode<synchronous>, transform_indices = @transform_3, window_bounds = array<i64: 512, 512>}, {pipeline_mode = #tpu.pipeline_mode<synchronous>, transform_indices = @transform_4, window_bounds = array<i64: 1, 512>}, {pipeline_mode = #tpu.pipeline_mode<synchronous>, transform_indices = @transform_5, window_bounds = array<i64: 512, 8>}, {pipeline_mode = #tpu.pipeline_mode<synchronous>, transform_indices = @transform_6, window_bounds = array<i64: 1, 8>}, {transform_indices = @transform_7, window_bounds = array<i64: 8, 8>}]} {
    %c0 = arith.constant 0 : index
    %c0_0 = arith.constant 0 : index
    %0 = vector.load %arg1[%c0, %c0_0] : memref<8x16xbf16, #tpu.memory_space<vmem>>, vector<8x16xbf16>
    %c0_1 = arith.constant 0 : index
    %c0_2 = arith.constant 0 : index
    %1 = vector.load %arg2[%c0_1, %c0_2] : memref<16x512xbf16, #tpu.memory_space<vmem>>, vector<16x512xbf16>
    %cst = arith.constant dense<0.000000e+00> : vector<8x512xf32>
    %2 = tpu.matmul %0, %1, %cst {dimension_numbers = #tpu.dot_dimension_numbers<[1], [0], [0], [1], [0, 0, 1, 1], [], []>} : vector<8x16xbf16>, vector<16x512xbf16>, vector<8x512xf32> -> vector<8x512xf32>
    %c0_3 = arith.constant 0 : index
    %c0_4 = arith.constant 0 : index
    %3 = vector.load %arg3[%c0_3, %c0_4] : memref<1x512xf32, #tpu.memory_space<vmem>>, vector<1x512xf32>
    %4 = vector.broadcast %3 : vector<1x512xf32> to vector<8x512xf32>
    %5 = arith.addf %2, %4 : vector<8x512xf32>
    %cst_5 = arith.constant 0.000000e+00 : f32
    %6 = vector.broadcast %cst_5 : f32 to vector<8x512xf32>
    %7 = arith.maximumf %5, %6 : vector<8x512xf32>
    %8 = arith.truncf %7 : vector<8x512xf32> to vector<8x512xbf16>
    %c0_6 = arith.constant 0 : index
    %c0_7 = arith.constant 0 : index
    %9 = vector.load %arg4[%c0_6, %c0_7] : memref<512x512xbf16, #tpu.memory_space<vmem>>, vector<512x512xbf16>
    %cst_8 = arith.constant dense<0.000000e+00> : vector<8x512xf32>
    %10 = tpu.matmul %8, %9, %cst_8 {dimension_numbers = #tpu.dot_dimension_numbers<[1], [0], [0], [1], [0, 0, 1, 1], [], []>} : vector<8x512xbf16>, vector<512x512xbf16>, vector<8x512xf32> -> vector<8x512xf32>
    %c0_9 = arith.constant 0 : index
    %c0_10 = arith.constant 0 : index
    %11 = vector.load %arg5[%c0_9, %c0_10] : memref<1x512xf32, #tpu.memory_space<vmem>>, vector<1x512xf32>
    %12 = vector.broadcast %11 : vector<1x512xf32> to vector<8x512xf32>
    %13 = arith.addf %10, %12 : vector<8x512xf32>
    %cst_11 = arith.constant 0.000000e+00 : f32
    %14 = vector.broadcast %cst_11 : f32 to vector<8x512xf32>
    %15 = arith.maximumf %13, %14 : vector<8x512xf32>
    %16 = arith.truncf %15 : vector<8x512xf32> to vector<8x512xbf16>
    %c0_12 = arith.constant 0 : index
    %c0_13 = arith.constant 0 : index
    %17 = vector.load %arg6[%c0_12, %c0_13] : memref<512x8xbf16, #tpu.memory_space<vmem>>, vector<512x8xbf16>
    %cst_14 = arith.constant dense<0.000000e+00> : vector<8x8xf32>
    %18 = tpu.matmul %16, %17, %cst_14 {dimension_numbers = #tpu.dot_dimension_numbers<[1], [0], [0], [1], [0, 0, 1, 1], [], []>} : vector<8x512xbf16>, vector<512x8xbf16>, vector<8x8xf32> -> vector<8x8xf32>
    %c0_15 = arith.constant 0 : index
    %c0_16 = arith.constant 0 : index
    %19 = vector.load %arg7[%c0_15, %c0_16] : memref<1x8xf32, #tpu.memory_space<vmem>>, vector<1x8xf32>
    %20 = vector.broadcast %19 : vector<1x8xf32> to vector<8x8xf32>
    %21 = arith.addf %18, %20 : vector<8x8xf32>
    %c0_17 = arith.constant 0 : index
    %c0_18 = arith.constant 0 : index
    %22 = vector.load %arg8[%c0_17, %c0_18] : memref<8x8xf32, #tpu.memory_space<vmem>>, vector<8x8xf32>
    tpu.vector_store %arg8[%c0_17, %c0_18], %21 {strides = array<i32>} : memref<8x8xf32, #tpu.memory_space<vmem>>, vector<8x8xf32>,
    return
  }
  func.func @transform_0(%arg0: i32) -> (i32, i32) {
    %c0_i32 = arith.constant 0 : i32
    %c0_i32_0 = arith.constant 0 : i32
    return %arg0, %c0_i32 : i32, i32
  }
  func.func @transform_1(%arg0: i32) -> (i32, i32) {
    %c0_i32 = arith.constant 0 : i32
    %c0_i32_0 = arith.constant 0 : i32
    %c0_i32_1 = arith.constant 0 : i32
    return %c0_i32, %c0_i32_0 : i32, i32
  }
  func.func @transform_2(%arg0: i32) -> (i32, i32) {
    %c0_i32 = arith.constant 0 : i32
    %c0_i32_0 = arith.constant 0 : i32
    %c0_i32_1 = arith.constant 0 : i32
    return %c0_i32, %c0_i32_0 : i32, i32
  }
  func.func @transform_3(%arg0: i32) -> (i32, i32) {
    %c0_i32 = arith.constant 0 : i32
    %c0_i32_0 = arith.constant 0 : i32
    %c0_i32_1 = arith.constant 0 : i32
    return %c0_i32, %c0_i32_0 : i32, i32
  }
  func.func @transform_4(%arg0: i32) -> (i32, i32) {
    %c0_i32 = arith.constant 0 : i32
    %c0_i32_0 = arith.constant 0 : i32
    %c0_i32_1 = arith.constant 0 : i32
    return %c0_i32, %c0_i32_0 : i32, i32
  }
  func.func @transform_5(%arg0: i32) -> (i32, i32) {
    %c0_i32 = arith.constant 0 : i32
    %c0_i32_0 = arith.constant 0 : i32
    %c0_i32_1 = arith.constant 0 : i32
    return %c0_i32, %c0_i32_0 : i32, i32
  }
  func.func @transform_6(%arg0: i32) -> (i32, i32) {
    %c0_i32 = arith.constant 0 : i32
    %c0_i32_0 = arith.constant 0 : i32
    %c0_i32_1 = arith.constant 0 : i32
    return %c0_i32, %c0_i32_0 : i32, i32
  }
  func.func @transform_7(%arg0: i32) -> (i32, i32) {
    %c0_i32 = arith.constant 0 : i32
    %c0_i32_0 = arith.constant 0 : i32
    return %arg0, %c0_i32 : i32, i32
  }
}

</mosaic_0001>

<bundles_post_ra>
// kernel: actor_forward.1
= control target key start
LH: loop header
LB: loop body
LE: loop exit
PB: predicated region body
PF: predicated region fallthrough
CT: control target
= control target key end

     0   :  { %12 = vsyncpa [#allocation3], 0  ;;  %s1975_s24 = smov [#allocation2]   ;;  %s2185_s0 = inlined_call_operand.vmem [shape: bf16[8,16], index: 0, kind: input, shape index: {}]   ;;  %s2186_s1 = inlined_call_operand.vmem [shape: bf16[16,512], index: 1, kind: input, shape index: {}]   ;;  %s2187_s2 = inlined_call_operand.vmem [shape: f32[1,512], index: 2, kind: input, shape index: {}]   ;;  %s2188_s3 = inlined_call_operand.hbm [shape: bf16[512,512], index: 3, kind: input, shape index: {}]   ;;  %s2189_s4 = inlined_call_operand.vmem [shape: f32[1,512], index: 4, kind: input, shape index: {}]   ;;  %s2190_s5 = inlined_call_operand.vmem [shape: bf16[512,8], index: 5, kind: input, shape index: {}]   ;;  %s2191_s6 = inlined_call_operand.vmem [shape: f32[1,8], index: 6, kind: input, shape index: {}]   ;;  %s2192_s7 = inlined_call_operand.vmem [shape: f32[8,8], index: 7, kind: output, shape index: {}]  }
   0x1   :  { %s24_s25 = sshll.u32 %s1975_s24, 4  ;;  %s1951_s28 = scalar_lea.hbm %s2188_s3, 16384  ;;  %s25_s25 = int_to_ptr.vmem [resolvable:$true] %s24_s25 }
   0x2   :  { %p1952_p0 = scmp.ne.s32.totalorder %s2188_s3, %s1951_s28  ;;  %p1955_p1 = scmp.lt.u32.totalorder %s1951_s28, %s2188_s3 }
   0x4   :  { %p1957_p2 = pnand %p1955_p1, %p1952_p0 }
   0x6   :  { %1960 = shalt.err (!%p1957_p2)
}
   0x7   :  { %s1961_s10 = scalar_lea.vmem %s25_s25, 16384  ;;  %p1966_p4 = scmp.lt.s32.totalorder %s25_s25, %s25_s25 }
   0x8   :  { %p1962_p3 = scmp.ne.s32.totalorder %s25_s25, %s1961_s10  ;;  %p1967_p5 = scmp.lt.s32.totalorder %s1961_s10, %s1961_s10 }
   0xa   :  { %p1968_p6 = por %p1967_p5, %p1966_p4 }
   0xc   :  { %p1969_p7 = pnand %p1968_p6, %p1962_p3 }
   0xe   :  { %1972 = shalt.err (!%p1969_p7)
}
   0xf   :  { %s1976_s11 = smov 256   ;;  %s1977_s12 = smov 16  }
  0x10   :  { %30 = dma.hbm_to_vmem [thread:$0]  %s2188_s3, 16384, %s25_s25, [#allocation3], %s1976_s11, %s1976_s11, %s1977_s12  }
  0x11   :  { %1973 = dma.done.wait [#allocation3], 16384  }
  0x12   :  { %1974 = vsyncadd [#allocation3], 4294950912  ;;  %v1978_v0 = vmov 0   ;;  %v1721_v1 = vld [vmem:[%s2186_s1 + $0x4] ss:$16 sps:$4 sm:$0xff]   ;;  %vm88_vm0 = vcmask 130048  }
  0x13   :  { %124 = vmatprep.mubr.bf16.mxu0 %v1978_v0  ;;  %165 = vmatprep.mubr.bf16.mxu1 %v1978_v0  ;;  %v1723_v2 = vld [vmem:[%s2186_s1] ss:$16 sps:$4 sm:$0xff]   ;;  %v1724_v4 = vld [vmem:[%s2186_s1 + $0xc] ss:$16 sps:$4 sm:$0xff]   ;;  %v1726_v5 = vld [vmem:[%s2186_s1 + $0x8] ss:$16 sps:$4 sm:$0xff]  }
  0x14   :  { %v41_v3 = vld [vmem:[%s2185_s0] sm:$0xf]  ;;  %92 = vmatprep.subr.bf16.mxu0 %v1721_v1  ;;  %133 = vmatprep.subr.bf16.mxu1 %v1724_v4  ;;  %v1729_v7 = vld [vmem:[#allocation2 + $0x4] ss:$16 sps:$4 sm:$0xff]   ;;  %v1730_v8 = vld [vmem:[#allocation2 + $0x8] ss:$16 sps:$4 sm:$0xff]  }
  0x15   :  { %93 = vmatpush1.bf16.msra.mxu0 %v1723_v2  ;;  %v1727_v6 = vld [vmem:[#allocation2] ss:$16 sps:$4 sm:$0xff]   ;;  %134 = vmatpush1.bf16.msra.mxu1 %v1726_v5  ;;  %v1732_v9 = vld [vmem:[#allocation2 + $0xc] ss:$16 sps:$4 sm:$0xff]   ;;  %v1735_v10 = vld [vmem:[#allocation2 + $0x24] ss:$16 sps:$4 sm:$0xff]  }
  0x16   :  { %972 = vmatprep.subr.bf16.mxu0 %v1729_v7  ;;  %1054 = vmatprep.subr.bf16.mxu1 %v1732_v9  ;;  %v1733_v11 = vld [vmem:[#allocation2 + $0x20] ss:$16 sps:$4 sm:$0xff]   ;;  %v1738_v12 = vld [vmem:[#allocation2 + $0x2c] ss:$16 sps:$4 sm:$0xff]   ;;  %v1736_v13 = vld [vmem:[#allocation2 + $0x28] ss:$16 sps:$4 sm:$0xff]  }
  0x17   :  { %v1741_v14 = vld [vmem:[#allocation2 + $0x44] ss:$16 sps:$4 sm:$0xff]   ;;  %v1744_v15 = vld [vmem:[#allocation2 + $0x4c] ss:$16 sps:$4 sm:$0xff]   ;;  %v1739_v16 = vld [vmem:[#allocation2 + $0x40] ss:$16 sps:$4 sm:$0xff]  }
  0x18   :  { %1498 = vmatmul.mubr.msk.bf16.vlgmr.msra.gmra.mrb[0].mxu0 %vm88_vm0, %v41_v3  ;;  %1499 = vmatmul.mubr.msk.bf16.vlgmr.msra.gmra.mrb[0].mxu1 %vm88_vm0, %v41_v3  ;;  %v1747_v17 = vld [vmem:[#allocation2 + $0x64] ss:$16 sps:$4 sm:$0xff]   ;;  %v1742_v18 = vld [vmem:[#allocation2 + $0x48] ss:$16 sps:$4 sm:$0xff]   ;;  %v1750_v19 = vld [vmem:[#allocation2 + $0x6c] ss:$16 sps:$4 sm:$0xff]  }
  0x19   :  { %973 = vmatpush1.bf16.msra.mxu0 %v1727_v6  ;;  %1055 = vmatpush1.bf16.msra.mxu1 %v1730_v8  ;;  %v1745_v20 = vld [vmem:[#allocation2 + $0x60] ss:$16 sps:$4 sm:$0xff]   ;;  %v1753_v21 = vld [vmem:[#allocation2 + $0x84] ss:$16 sps:$4 sm:$0xff]   ;;  %v1748_v22 = vld [vmem:[#allocation2 + $0x68] ss:$16 sps:$4 sm:$0xff]   ;;  %v48_v8 = vlaneseq }
  0x1a   :  { %974 = vmatprep.subr.bf16.mxu0 %v1735_v10  ;;  %1056 = vmatprep.subr.bf16.mxu1 %v1738_v12  ;;  %v1756_v23 = vld [vmem:[#allocation2 + $0x8c] ss:$16 sps:$4 sm:$0xff]   ;;  %v1751_v24 = vld [vmem:[#allocation2 + $0x80] ss:$16 sps:$4 sm:$0xff]   ;;  %v1759_v25 = vld [vmem:[#allocation2 + $0xa4] ss:$16 sps:$4 sm:$0xff]  }
  0x1b   :  { %v1754_v26 = vld [vmem:[#allocation2 + $0x88] ss:$16 sps:$4 sm:$0xff]   ;;  %v1762_v27 = vld [vmem:[#allocation2 + $0xac] ss:$16 sps:$4 sm:$0xff]   ;;  %v1757_v28 = vld [vmem:[#allocation2 + $0xa0] ss:$16 sps:$4 sm:$0xff]  }
  0x1c   :  { %v1765_v29 = vld [vmem:[#allocation2 + $0xc4] ss:$16 sps:$4 sm:$0xff]   ;;  %v1760_v30 = vld [vmem:[#allocation2 + $0xa8] ss:$16 sps:$4 sm:$0xff]   ;;  %v1768_v31 = vld [vmem:[#allocation2 + $0xcc] ss:$16 sps:$4 sm:$0xff]  }
  0x1d   :  { %975 = vmatpush1.bf16.msra.mxu0 %v1733_v11  ;;  %1057 = vmatpush1.bf16.msra.mxu1 %v1736_v13  ;;  %v1763_v32 = vld [vmem:[#allocation2 + $0xc0] ss:$16 sps:$4 sm:$0xff]   ;;  %v1771_v33 = vld [vmem:[#allocation2 + $0xe4] ss:$16 sps:$4 sm:$0xff]   ;;  %v1766_v34 = vld [vmem:[#allocation2 + $0xc8] ss:$16 sps:$4 sm:$0xff]  }
  0x1e   :  { %976 = vmatprep.subr.bf16.mxu0 %v1741_v14  ;;  %1058 = vmatprep.subr.bf16.mxu1 %v1744_v15  ;;  %v1774_v35 = vld [vmem:[#allocation2 + $0xec] ss:$16 sps:$4 sm:$0xff]   ;;  %v1769_v36 = vld [vmem:[#allocation2 + $0xe0] ss:$16 sps:$4 sm:$0xff]   ;;  %v1777_v37 = vld [vmem:[#allocation2 + $0x104] ss:$16 sps:$4 sm:$0xff]  }
  0x1f   :  { %v1772_v38 = vld [vmem:[#allocation2 + $0xe8] ss:$16 sps:$4 sm:$0xff]   ;;  %v1780_v39 = vld [vmem:[#allocation2 + $0x10c] ss:$16 sps:$4 sm:$0xff]   ;;  %v1775_v40 = vld [vmem:[#allocation2 + $0x100] ss:$16 sps:$4 sm:$0xff]  }
  0x20   :  { %v1783_v41 = vld [vmem:[#allocation2 + $0x124] ss:$16 sps:$4 sm:$0xff]   ;;  %v1778_v42 = vld [vmem:[#allocation2 + $0x108] ss:$16 sps:$4 sm:$0xff]   ;;  %v1781_v43 = vld [vmem:[#allocation2 + $0x120] ss:$16 sps:$4 sm:$0xff]  }
  0x21   :  { %977 = vmatpush1.bf16.msra.mxu0 %v1739_v16  ;;  %1059 = vmatpush1.bf16.msra.mxu1 %v1742_v18  ;;  %v1786_v44 = vld [vmem:[#allocation2 + $0x12c] ss:$16 sps:$4 sm:$0xff]   ;;  %v1784_v45 = vld [vmem:[#allocation2 + $0x128] ss:$16 sps:$4 sm:$0xff]   ;;  %v1789_v46 = vld [vmem:[#allocation2 + $0x144] ss:$16 sps:$4 sm:$0xff]  }
  0x22   :  { %978 = vmatprep.subr.bf16.mxu0 %v1747_v17  ;;  %1060 = vmatprep.subr.bf16.mxu1 %v1750_v19  ;;  %v1792_v47 = vld [vmem:[#allocation2 + $0x14c] ss:$16 sps:$4 sm:$0xff]   ;;  %v1787_v48 = vld [vmem:[#allocation2 + $0x140] ss:$16 sps:$4 sm:$0xff]   ;;  %v1795_v49 = vld [vmem:[#allocation2 + $0x164] ss:$16 sps:$4 sm:$0xff]  }
  0x23   :  { %v1790_v50 = vld [vmem:[#allocation2 + $0x148] ss:$16 sps:$4 sm:$0xff]   ;;  %v1798_v51 = vld [vmem:[#allocation2 + $0x16c] ss:$16 sps:$4 sm:$0xff]   ;;  %v1793_v52 = vld [vmem:[#allocation2 + $0x160] ss:$16 sps:$4 sm:$0xff]  }
  0x24   :  { %v1801_v53 = vld [vmem:[#allocation2 + $0x184] ss:$16 sps:$4 sm:$0xff]   ;;  %v1796_v54 = vld [vmem:[#allocation2 + $0x168] ss:$16 sps:$4 sm:$0xff]   ;;  %v1804_v55 = vld [vmem:[#allocation2 + $0x18c] ss:$16 sps:$4 sm:$0xff]  }
  0x25   :  { %979 = vmatpush1.bf16.msra.mxu0 %v1745_v20  ;;  %1061 = vmatpush1.bf16.msra.mxu1 %v1748_v22  ;;  %v1799_v56 = vld [vmem:[#allocation2 + $0x180] ss:$16 sps:$4 sm:$0xff]   ;;  %v1807_v57 = vld [vmem:[#allocation2 + $0x1a4] ss:$16 sps:$4 sm:$0xff]   ;;  %v1802_v58 = vld [vmem:[#allocation2 + $0x188] ss:$16 sps:$4 sm:$0xff]  }
  0x26   :  { %980 = vmatprep.subr.bf16.mxu0 %v1753_v21  ;;  %1062 = vmatprep.subr.bf16.mxu1 %v1756_v23  ;;  %v1810_v59 = vld [vmem:[#allocation2 + $0x1ac] ss:$16 sps:$4 sm:$0xff]   ;;  %v1805_v60 = vld [vmem:[#allocation2 + $0x1a0] ss:$16 sps:$4 sm:$0xff]   ;;  %v1808_v61 = vld [vmem:[#allocation2 + $0x1a8] ss:$16 sps:$4 sm:$0xff]  }
  0x27   :  { %v1813_v62 = vld [vmem:[#allocation2 + $0x1c4] ss:$16 sps:$4 sm:$0xff]   ;;  %v1816_v63 = vld [vmem:[#allocation2 + $0x1cc] ss:$16 sps:$4 sm:$0xff]   ;;  %v1811_v0 = vld [vmem:[#allocation2 + $0x1c0] ss:$16 sps:$4 sm:$0xff]  }
  0x28   :  { %v1814_v1 = vld [vmem:[#allocation2 + $0x1c8] ss:$16 sps:$4 sm:$0xff]   ;;  %v1819_v2 = vld [vmem:[#allocation2 + $0x1e4] ss:$16 sps:$4 sm:$0xff]   ;;  %v1822_v3 = vld [vmem:[#allocation2 + $0x1ec] ss:$16 sps:$4 sm:$0xff]  }
  0x29   :  { %981 = vmatpush1.bf16.msra.mxu0 %v1751_v24  ;;  %1063 = vmatpush1.bf16.msra.mxu1 %v1754_v26  ;;  %v1817_v4 = vld [vmem:[#allocation2 + $0x1e0] ss:$16 sps:$4 sm:$0xff]   ;;  %v1820_v5 = vld [vmem:[#allocation2 + $0x1e8] ss:$16 sps:$4 sm:$0xff]   ;;  %v1825_v6 = vld [vmem:[#allocation2 + $0x204] ss:$16 sps:$4 sm:$0xff]  }
  0x2a   :  { %982 = vmatprep.subr.bf16.mxu0 %v1759_v25  ;;  %1064 = vmatprep.subr.bf16.mxu1 %v1762_v27  ;;  %v1828_v7 = vld [vmem:[#allocation2 + $0x20c] ss:$16 sps:$4 sm:$0xff]   ;;  %v2046_v9 = vshrl.u32 %v48_v8, 7  ;;  %v2052_v11 = vld [vmem:[%s2187_s2] sm:$0xf]  ;;  %vm1487_vm1 = vcmask 64512  }
  0x2b   :  { %v1885_v8 = vld [vmem:[#allocation2 + $0x344] ss:$16 sps:$4 sm:$0xff]  }
  0x2c   :  { %v50_v10 = vsub.s32 0, %v2046_v9  ;;  %v54_v12 = vsub.s32 1, %v2046_v9  ;;  %v62_v13 = vsub.s32 3, %v2046_v9 }
  0x2d   :  { %983 = vmatpush1.bf16.msra.mxu0 %v1757_v28  ;;  %1065 = vmatpush1.bf16.msra.mxu1 %v1760_v30 }
  0x2e   :  { %984 = vmatprep.subr.bf16.mxu0 %v1765_v29  ;;  %1066 = vmatprep.subr.bf16.mxu1 %v1768_v31  ;;  %v51_v14 = vrot.slane %v2052_v11, %v50_v10  ;;  %v55_v15 = vrot.slane %v2052_v11, %v54_v12  ;;  %v63_v17 = vrot.slane %v2052_v11, %v62_v13  ;;  %v1823_v31 = vld [vmem:[#allocation2 + $0x200] ss:$16 sps:$4 sm:$0xff]  }
  0x31   :  { %985 = vmatpush1.bf16.msra.mxu0 %v1763_v32  ;;  %1067 = vmatpush1.bf16.msra.mxu1 %v1766_v34  ;;  %v1826_v32 = vld [vmem:[#allocation2 + $0x208] ss:$16 sps:$4 sm:$0xff]  }
  0x32   :  { %986 = vmatprep.subr.bf16.mxu0 %v1771_v33  ;;  %1068 = vmatprep.subr.bf16.mxu1 %v1774_v35  ;;  %v1831_v35 = vld [vmem:[#allocation2 + $0x224] ss:$16 sps:$4 sm:$0xff]  }
  0x35   :  { %987 = vmatpush1.bf16.msra.mxu0 %v1769_v36  ;;  %1069 = vmatpush1.bf16.msra.mxu1 %v1772_v38  ;;  %v1834_v36 = vld [vmem:[#allocation2 + $0x22c] ss:$16 sps:$4 sm:$0xff]   ;;  %v1829_v38 = vld [vmem:[#allocation2 + $0x220] ss:$16 sps:$4 sm:$0xff]  }
  0x36   :  { %988 = vmatprep.subr.bf16.mxu0 %v1777_v37  ;;  %1070 = vmatprep.subr.bf16.mxu1 %v1780_v39  ;;  %v1832_v39 = vld [vmem:[#allocation2 + $0x228] ss:$16 sps:$4 sm:$0xff]  }
  0x39   :  { %989 = vmatpush1.bf16.msra.mxu0 %v1775_v40  ;;  %1071 = vmatpush1.bf16.msra.mxu1 %v1778_v42  ;;  %v1837_v40 = vld [vmem:[#allocation2 + $0x244] ss:$16 sps:$4 sm:$0xff]   ;;  %v1835_v42 = vld [vmem:[#allocation2 + $0x240] ss:$16 sps:$4 sm:$0xff]  }
  0x3a   :  { %990 = vmatprep.subr.bf16.mxu0 %v1783_v41  ;;  %1072 = vmatprep.subr.bf16.mxu1 %v1786_v44  ;;  %v1840_v41 = vld [vmem:[#allocation2 + $0x24c] ss:$16 sps:$4 sm:$0xff]   ;;  %v1843_v44 = vld [vmem:[#allocation2 + $0x264] ss:$16 sps:$4 sm:$0xff]  }
  0x3d   :  { %991 = vmatpush1.bf16.msra.mxu0 %v1781_v43  ;;  %1073 = vmatpush1.bf16.msra.mxu1 %v1784_v45  ;;  %v1838_v43 = vld [vmem:[#allocation2 + $0x248] ss:$16 sps:$4 sm:$0xff]   ;;  %v1846_v45 = vld [vmem:[#allocation2 + $0x26c] ss:$16 sps:$4 sm:$0xff]  }
  0x3e   :  { %992 = vmatprep.subr.bf16.mxu0 %v1789_v46  ;;  %1074 = vmatprep.subr.bf16.mxu1 %v1792_v47  ;;  %v1841_v46 = vld [vmem:[#allocation2 + $0x260] ss:$16 sps:$4 sm:$0xff]   ;;  %v1844_v47 = vld [vmem:[#allocation2 + $0x268] ss:$16 sps:$4 sm:$0xff]  }
  0x41   :  { %993 = vmatpush1.bf16.msra.mxu0 %v1787_v48  ;;  %1075 = vmatpush1.bf16.msra.mxu1 %v1790_v50  ;;  %v1849_v48 = vld [vmem:[#allocation2 + $0x284] ss:$16 sps:$4 sm:$0xff]   ;;  %v1847_v50 = vld [vmem:[#allocation2 + $0x280] ss:$16 sps:$4 sm:$0xff]  }
  0x42   :  { %994 = vmatprep.subr.bf16.mxu0 %v1795_v49  ;;  %1076 = vmatprep.subr.bf16.mxu1 %v1798_v51  ;;  %v1852_v49 = vld [vmem:[#allocation2 + $0x28c] ss:$16 sps:$4 sm:$0xff]   ;;  %v1850_v51 = vld [vmem:[#allocation2 + $0x288] ss:$16 sps:$4 sm:$0xff]  }
  0x45   :  { %995 = vmatpush1.bf16.msra.mxu0 %v1793_v52  ;;  %1077 = vmatpush1.bf16.msra.mxu1 %v1796_v54  ;;  %v1855_v52 = vld [vmem:[#allocation2 + $0x2a4] ss:$16 sps:$4 sm:$0xff]   ;;  %v1853_v54 = vld [vmem:[#allocation2 + $0x2a0] ss:$16 sps:$4 sm:$0xff]  }
  0x46   :  { %996 = vmatprep.subr.bf16.mxu0 %v1801_v53  ;;  %1078 = vmatprep.subr.bf16.mxu1 %v1804_v55  ;;  %v1858_v53 = vld [vmem:[#allocation2 + $0x2ac] ss:$16 sps:$4 sm:$0xff]   ;;  %v1856_v55 = vld [vmem:[#allocation2 + $0x2a8] ss:$16 sps:$4 sm:$0xff]  }
  0x49   :  { %997 = vmatpush1.bf16.msra.mxu0 %v1799_v56  ;;  %1079 = vmatpush1.bf16.msra.mxu1 %v1802_v58  ;;  %v1861_v56 = vld [vmem:[#allocation2 + $0x2c4] ss:$16 sps:$4 sm:$0xff]   ;;  %v1859_v58 = vld [vmem:[#allocation2 + $0x2c0] ss:$16 sps:$4 sm:$0xff]  }
  0x4a   :  { %998 = vmatprep.subr.bf16.mxu0 %v1807_v57  ;;  %1080 = vmatprep.subr.bf16.mxu1 %v1810_v59  ;;  %v1864_v57 = vld [vmem:[#allocation2 + $0x2cc] ss:$16 sps:$4 sm:$0xff]   ;;  %v1862_v59 = vld [vmem:[#allocation2 + $0x2c8] ss:$16 sps:$4 sm:$0xff]  }
  0x4d   :  { %999 = vmatpush1.bf16.msra.mxu0 %v1805_v60  ;;  %1081 = vmatpush1.bf16.msra.mxu1 %v1808_v61  ;;  %v1867_v60 = vld [vmem:[#allocation2 + $0x2e4] ss:$16 sps:$4 sm:$0xff]   ;;  %v1870_v61 = vld [vmem:[#allocation2 + $0x2ec] ss:$16 sps:$4 sm:$0xff]  }
  0x4e   :  { %1000 = vmatprep.subr.bf16.mxu0 %v1813_v62  ;;  %1082 = vmatprep.subr.bf16.mxu1 %v1816_v63  ;;  %v1865_v62 = vld [vmem:[#allocation2 + $0x2e0] ss:$16 sps:$4 sm:$0xff]   ;;  %v1868_v63 = vld [vmem:[#allocation2 + $0x2e8] ss:$16 sps:$4 sm:$0xff]  }
  0x51   :  { %1001 = vmatpush1.bf16.msra.mxu0 %v1811_v0  ;;  %1083 = vmatpush1.bf16.msra.mxu1 %v1814_v1  ;;  %v1873_v0 = vld [vmem:[#allocation2 + $0x304] ss:$16 sps:$4 sm:$0xff]   ;;  %v1876_v1 = vld [vmem:[#allocation2 + $0x30c] ss:$16 sps:$4 sm:$0xff]  }
  0x52   :  { %1002 = vmatprep.subr.bf16.mxu0 %v1819_v2  ;;  %1084 = vmatprep.subr.bf16.mxu1 %v1822_v3  ;;  %v1871_v2 = vld [vmem:[#allocation2 + $0x300] ss:$16 sps:$4 sm:$0xff]   ;;  %v1874_v3 = vld [vmem:[#allocation2 + $0x308] ss:$16 sps:$4 sm:$0xff]  }
  0x55   :  { %1003 = vmatpush1.bf16.msra.mxu0 %v1817_v4  ;;  %1085 = vmatpush1.bf16.msra.mxu1 %v1820_v5  ;;  %v1879_v4 = vld [vmem:[#allocation2 + $0x324] ss:$16 sps:$4 sm:$0xff]   ;;  %v1882_v5 = vld [vmem:[#allocation2 + $0x32c] ss:$16 sps:$4 sm:$0xff]  }
  0x56   :  { %1013 = vmatprep.subr.bf16.mxu0 %v1825_v6  ;;  %1095 = vmatprep.subr.bf16.mxu1 %v1828_v7  ;;  %v1877_v6 = vld [vmem:[#allocation2 + $0x320] ss:$16 sps:$4 sm:$0xff]   ;;  %v1880_v7 = vld [vmem:[#allocation2 + $0x328] ss:$16 sps:$4 sm:$0xff]  }
  0xeb   :  { %v126_v16 = vpop.f32.mrb[0].mxu0  ;;  %v2065_v22 = vpop.f32.mrb[0].mxu1 }
  0xec   :  { %v127_v18 = vadd.f32 %v126_v16, %v51_v14  ;;  %v128_v19 = vpop.f32.mrb[1].mxu0  ;;  %v169_v25 = vpop.f32.mrb[1].mxu1  ;;  %v1888_v14 = vld [vmem:[#allocation2 + $0x34c] ss:$16 sps:$4 sm:$0xff]   ;;  %v1886_v16 = vld [vmem:[#allocation2 + $0x348] ss:$16 sps:$4 sm:$0xff]  }
  0xed   :  { %v129_v20 = vadd.f32 %v128_v19, %v55_v15  ;;  %v130_v21 = vpop.f32.mrb[2].mxu0  ;;  %v170_v27 = vadd.f32 %v169_v25, %v63_v17  ;;  %v171_v28 = vpop.f32.mrb[2].mxu1  ;;  %v1883_v15 = vld [vmem:[#allocation2 + $0x340] ss:$16 sps:$4 sm:$0xff]   ;;  %v1891_v17 = vld [vmem:[#allocation2 + $0x364] ss:$16 sps:$4 sm:$0xff]  }
  0xee   :  { %v174_v23 = vmax.f32 %v127_v18, 0.0  ;;  %v131_v24 = vpop.f32.mrb[3].mxu0  ;;  %v172_v29 = vpop.f32.mrb[3].mxu1  ;;  %v1894_v18 = vld [vmem:[#allocation2 + $0x36c] ss:$16 sps:$4 sm:$0xff]  }
  0xef   :  { %v175_v26 = vmax.f32 %v129_v20, 0.0  ;;  %v177_v33 = vmax.f32 %v170_v27, 0.0  ;;  %v1889_v19 = vld [vmem:[#allocation2 + $0x360] ss:$16 sps:$4 sm:$0xff]   ;;  %v1892_v20 = vld [vmem:[#allocation2 + $0x368] ss:$16 sps:$4 sm:$0xff]  }
  0xf0   :  { %v178_v34 = vpack.c.bf16 %v174_v23, %v174_v23  ;;  %v1897_v21 = vld [vmem:[#allocation2 + $0x384] ss:$16 sps:$4 sm:$0xff]   ;;  %v1900_v23 = vld [vmem:[#allocation2 + $0x38c] ss:$16 sps:$4 sm:$0xff]   ;;  %v1895_v24 = vld [vmem:[#allocation2 + $0x380] ss:$16 sps:$4 sm:$0xff]  }
  0xf1   :  { %v179_v30 = vpack.c.bf16 %v175_v26, %v175_v26  ;;  %v181_v37 = vpack.c.bf16 %v177_v33, %v177_v33  ;;  %v1898_v25 = vld [vmem:[#allocation2 + $0x388] ss:$16 sps:$4 sm:$0xff]   ;;  %v58_v26 = vsub.s32 2, %v2046_v9  ;;  %v1903_v27 = vld [vmem:[#allocation2 + $0x3a4] ss:$16 sps:$4 sm:$0xff]  }
  0xf2   :  { %v1906_v28 = vld [vmem:[#allocation2 + $0x3ac] ss:$16 sps:$4 sm:$0xff]   ;;  %v1901_v29 = vld [vmem:[#allocation2 + $0x3a0] ss:$16 sps:$4 sm:$0xff]  }
  0xf3   :  { %1004 = vmatprep.mubr.bf16.mxu0 %v179_v30  ;;  %1086 = vmatprep.mubr.bf16.mxu1 %v179_v30  ;;  %v1904_v30 = vld [vmem:[#allocation2 + $0x3a8] ss:$16 sps:$4 sm:$0xff]   ;;  %v1912_v33 = vld [vmem:[#allocation2 + $0x3cc] ss:$16 sps:$4 sm:$0xff]  }
  0xf4   :  { %1005 = vmatmul.mubr.bf16.vlgmr.msra.gmra.mrb[4].mxu0 %v178_v34  ;;  %1087 = vmatmul.mubr.bf16.vlgmr.msra.gmra.mrb[4].mxu1 %v178_v34  ;;  %v1907_v34 = vld [vmem:[#allocation2 + $0x3c0] ss:$16 sps:$4 sm:$0xff]  }
  0xf5   :  { %1014 = vmatpush1.bf16.msra.mxu0 %v1823_v31  ;;  %1096 = vmatpush1.bf16.msra.mxu1 %v1826_v32  ;;  %v59_v31 = vrot.slane %v2052_v11, %v58_v26  ;;  %v1909_v32 = vld [vmem:[#allocation2 + $0x3c4] ss:$16 sps:$4 sm:$0xff]  }
  0xf6   :  { %1015 = vmatprep.subr.bf16.mxu0 %v1831_v35  ;;  %1097 = vmatprep.subr.bf16.mxu1 %v1834_v36  ;;  %v1910_v35 = vld [vmem:[#allocation2 + $0x3c8] ss:$16 sps:$4 sm:$0xff]   ;;  %v1919_v11 = vld [vmem:[%s2190_s5 + $0x40] sm:$0xff]  }
  0xf7   :  { %1045 = vmatprep.mubr.bf16.mxu0 %v181_v37  ;;  %1127 = vmatprep.mubr.bf16.mxu1 %v181_v37  ;;  %v168_v36 = vadd.f32 %v2065_v22, %v59_v31  ;;  %v1915_v37 = vld [vmem:[#allocation2 + $0x3e4] ss:$16 sps:$4 sm:$0xff]  }
  0xf8   :  { %v1921_v22 = vld [vmem:[%s2190_s5] sm:$0xff]  }
  0xf9   :  { %1016 = vmatpush1.bf16.msra.mxu0 %v1829_v38  ;;  %1098 = vmatpush1.bf16.msra.mxu1 %v1832_v39  ;;  %v1918_v38 = vld [vmem:[#allocation2 + $0x3ec] ss:$16 sps:$4 sm:$0xff]   ;;  %v1913_v39 = vld [vmem:[#allocation2 + $0x3e0] ss:$16 sps:$4 sm:$0xff]  }
  0xfa   :  { %1017 = vmatprep.subr.bf16.mxu0 %v1837_v40  ;;  %1099 = vmatprep.subr.bf16.mxu1 %v1840_v41  ;;  %v1916_v40 = vld [vmem:[#allocation2 + $0x3e8] ss:$16 sps:$4 sm:$0xff]   ;;  %v176_v41 = vmax.f32 %v168_v36, 0.0 }
  0xfd   :  { %1018 = vmatpush1.bf16.msra.mxu0 %v1835_v42  ;;  %1100 = vmatpush1.bf16.msra.mxu1 %v1838_v43  ;;  %v1920_v42 = vld [vmem:[%s2190_s5 + $0xc0] sm:$0xff]  }
  0xfe   :  { %1019 = vmatprep.subr.bf16.mxu0 %v1843_v44  ;;  %1101 = vmatprep.subr.bf16.mxu1 %v1846_v45  ;;  %v1922_v43 = vld [vmem:[%s2190_s5 + $0x80] sm:$0xff]   ;;  %v180_v44 = vpack.c.bf16 %v176_v41, %v176_v41  ;;  %v1923_v45 = vld [vmem:[%s2190_s5 + $0x48] sm:$0xff]  }
 0x101   :  { %1020 = vmatpush1.bf16.msra.mxu0 %v1841_v46  ;;  %1102 = vmatpush1.bf16.msra.mxu1 %v1844_v47  ;;  %v1924_v46 = vld [vmem:[%s2190_s5 + $0xc8] sm:$0xff]  }
 0x102   :  { %1021 = vmatprep.subr.bf16.mxu0 %v1849_v48  ;;  %1103 = vmatprep.subr.bf16.mxu1 %v1852_v49  ;;  %v1925_v47 = vld [vmem:[%s2190_s5 + $0x8] sm:$0xff]   ;;  %v1927_v49 = vld [vmem:[%s2190_s5 + $0x50] sm:$0xff]  }
 0x103   :  { %v1926_v48 = vld [vmem:[%s2190_s5 + $0x88] sm:$0xff]  }
 0x105   :  { %1022 = vmatpush1.bf16.msra.mxu0 %v1847_v50  ;;  %1104 = vmatpush1.bf16.msra.mxu1 %v1850_v51  ;;  %v1928_v50 = vld [vmem:[%s2190_s5 + $0xd0] sm:$0xff]  }
 0x106   :  { %1023 = vmatprep.subr.bf16.mxu0 %v1855_v52  ;;  %1105 = vmatprep.subr.bf16.mxu1 %v1858_v53  ;;  %v1929_v51 = vld [vmem:[%s2190_s5 + $0x10] sm:$0xff]   ;;  %v1931_v53 = vld [vmem:[%s2190_s5 + $0x58] sm:$0xff]  }
 0x107   :  { %v1930_v52 = vld [vmem:[%s2190_s5 + $0x90] sm:$0xff]  }
 0x109   :  { %1024 = vmatpush1.bf16.msra.mxu0 %v1853_v54  ;;  %1106 = vmatpush1.bf16.msra.mxu1 %v1856_v55  ;;  %v1932_v54 = vld [vmem:[%s2190_s5 + $0xd8] sm:$0xff]  }
 0x10a   :  { %1025 = vmatprep.subr.bf16.mxu0 %v1861_v56  ;;  %1107 = vmatprep.subr.bf16.mxu1 %v1864_v57  ;;  %v1933_v55 = vld [vmem:[%s2190_s5 + $0x18] sm:$0xff]   ;;  %v1935_v57 = vld [vmem:[%s2190_s5 + $0x60] sm:$0xff]  }
 0x10b   :  { %v1934_v56 = vld [vmem:[%s2190_s5 + $0x98] sm:$0xff]  }
 0x10d   :  { %1026 = vmatpush1.bf16.msra.mxu0 %v1859_v58  ;;  %1108 = vmatpush1.bf16.msra.mxu1 %v1862_v59  ;;  %v1936_v58 = vld [vmem:[%s2190_s5 + $0xe0] sm:$0xff]  }
 0x10e   :  { %1027 = vmatprep.subr.bf16.mxu0 %v1867_v60  ;;  %1109 = vmatprep.subr.bf16.mxu1 %v1870_v61  ;;  %v1937_v59 = vld [vmem:[%s2190_s5 + $0x20] sm:$0xff]   ;;  %v1939_v61 = vld [vmem:[%s2190_s5 + $0x68] sm:$0xff]  }
 0x10f   :  { %v1938_v60 = vld [vmem:[%s2190_s5 + $0xa0] sm:$0xff]  }
 0x111   :  { %1028 = vmatpush1.bf16.msra.mxu0 %v1865_v62  ;;  %1110 = vmatpush1.bf16.msra.mxu1 %v1868_v63  ;;  %v1940_v62 = vld [vmem:[%s2190_s5 + $0xe8] sm:$0xff]  }
 0x112   :  { %1029 = vmatprep.subr.bf16.mxu0 %v1873_v0  ;;  %1111 = vmatprep.subr.bf16.mxu1 %v1876_v1  ;;  %v1941_v63 = vld [vmem:[%s2190_s5 + $0x28] sm:$0xff]   ;;  %v1943_v1 = vld [vmem:[%s2190_s5 + $0x70] sm:$0xff]  }
 0x113   :  { %v1942_v0 = vld [vmem:[%s2190_s5 + $0xa8] sm:$0xff]  }
 0x115   :  { %1030 = vmatpush1.bf16.msra.mxu0 %v1871_v2  ;;  %1112 = vmatpush1.bf16.msra.mxu1 %v1874_v3  ;;  %v1944_v2 = vld [vmem:[%s2190_s5 + $0xf0] sm:$0xff]  }
 0x116   :  { %1031 = vmatprep.subr.bf16.mxu0 %v1879_v4  ;;  %1113 = vmatprep.subr.bf16.mxu1 %v1882_v5  ;;  %v1945_v3 = vld [vmem:[%s2190_s5 + $0x30] sm:$0xff]   ;;  %v1947_v5 = vld [vmem:[%s2190_s5 + $0x78] sm:$0xff]  }
 0x117   :  { %v1946_v4 = vld [vmem:[%s2190_s5 + $0xb0] sm:$0xff]  }
 0x119   :  { %1032 = vmatpush1.bf16.msra.mxu0 %v1877_v6  ;;  %1114 = vmatpush1.bf16.msra.mxu1 %v1880_v7  ;;  %v1948_v6 = vld [vmem:[%s2190_s5 + $0xf8] sm:$0xff]  }
 0x11a   :  { %1033 = vmatprep.subr.bf16.mxu0 %v1885_v8  ;;  %1115 = vmatprep.subr.bf16.mxu1 %v1888_v14  ;;  %v1949_v7 = vld [vmem:[%s2190_s5 + $0x38] sm:$0xff]   ;;  %v310_v14 = vld [vmem:[%s2189_s4] sm:$0xf] }
 0x11b   :  { %v1950_v8 = vld [vmem:[%s2190_s5 + $0xb8] sm:$0xff]  }
 0x11d   :  { %1034 = vmatpush1.bf16.msra.mxu0 %v1883_v15  ;;  %1116 = vmatpush1.bf16.msra.mxu1 %v1886_v16  ;;  %v315_v15 = vrot.slane %v310_v14, %v50_v10  ;;  %v323_v16 = vrot.slane %v310_v14, %v58_v26 }
 0x11e   :  { %1035 = vmatprep.subr.bf16.mxu0 %v1891_v17  ;;  %1117 = vmatprep.subr.bf16.mxu1 %v1894_v18  ;;  %v319_v17 = vrot.slane %v310_v14, %v54_v12  ;;  %v327_v18 = vrot.slane %v310_v14, %v62_v13 }
 0x121   :  { %1036 = vmatpush1.bf16.msra.mxu0 %v1889_v19  ;;  %1118 = vmatpush1.bf16.msra.mxu1 %v1892_v20 }
 0x122   :  { %1037 = vmatprep.subr.bf16.mxu0 %v1897_v21  ;;  %1119 = vmatprep.subr.bf16.mxu1 %v1900_v23 }
 0x125   :  { %1038 = vmatpush1.bf16.msra.mxu0 %v1895_v24  ;;  %1120 = vmatpush1.bf16.msra.mxu1 %v1898_v25 }
 0x126   :  { %1039 = vmatprep.subr.bf16.mxu0 %v1903_v27  ;;  %1121 = vmatprep.subr.bf16.mxu1 %v1906_v28 }
 0x129   :  { %1040 = vmatpush1.bf16.msra.mxu0 %v1901_v29  ;;  %1122 = vmatpush1.bf16.msra.mxu1 %v1904_v30 }
 0x12a   :  { %1041 = vmatprep.subr.bf16.mxu0 %v1909_v32  ;;  %1123 = vmatprep.subr.bf16.mxu1 %v1912_v33 }
 0x12d   :  { %1042 = vmatpush1.bf16.msra.mxu0 %v1907_v34  ;;  %1124 = vmatpush1.bf16.msra.mxu1 %v1910_v35 }
 0x12e   :  { %1043 = vmatprep.subr.bf16.mxu0 %v1915_v37  ;;  %1125 = vmatprep.subr.bf16.mxu1 %v1918_v38  ;;  %v1628_v38 = vld [vmem:[%s2191_s6] ss:$0 sm:$0xff] }
 0x131   :  { %1044 = vmatpush1.bf16.msra.mxu0 %v1913_v39  ;;  %1126 = vmatpush1.bf16.msra.mxu1 %v1916_v40 }
 0x132   :  { %1661 = vmatprep.subr.bf16.mxu0 %v1919_v11  ;;  %1683 = vmatprep.subr.bf16.mxu1 %v1920_v42 }
 0x134   :  { %1046 = vmatmul.mubr.bf16.vlgmr.msra.gmra.mrb[4].mxu0 %v180_v44  ;;  %1128 = vmatmul.mubr.bf16.vlgmr.msra.gmra.mrb[4].mxu1 %v180_v44 }
 0x135   :  { %1662 = vmatpush3.bf16.msra.mxu0 %v1921_v22  ;;  %1684 = vmatpush3.bf16.msra.mxu1 %v1922_v43 }
 0x136   :  { %1663 = vmatprep.subr.bf16.mxu0 %v1923_v45  ;;  %1685 = vmatprep.subr.bf16.mxu1 %v1924_v46 }
 0x139   :  { %1664 = vmatpush3.bf16.msra.mxu0 %v1925_v47  ;;  %1686 = vmatpush3.bf16.msra.mxu1 %v1926_v48 }
 0x13a   :  { %1665 = vmatprep.subr.bf16.mxu0 %v1927_v49  ;;  %1687 = vmatprep.subr.bf16.mxu1 %v1928_v50 }
 0x13d   :  { %1666 = vmatpush3.bf16.msra.mxu0 %v1929_v51  ;;  %1688 = vmatpush3.bf16.msra.mxu1 %v1930_v52 }
 0x13e   :  { %1667 = vmatprep.subr.bf16.mxu0 %v1931_v53  ;;  %1689 = vmatprep.subr.bf16.mxu1 %v1932_v54 }
 0x141   :  { %1668 = vmatpush3.bf16.msra.mxu0 %v1933_v55  ;;  %1690 = vmatpush3.bf16.msra.mxu1 %v1934_v56 }
 0x142   :  { %1669 = vmatprep.subr.bf16.mxu0 %v1935_v57  ;;  %1691 = vmatprep.subr.bf16.mxu1 %v1936_v58 }
 0x145   :  { %1670 = vmatpush3.bf16.msra.mxu0 %v1937_v59  ;;  %1692 = vmatpush3.bf16.msra.mxu1 %v1938_v60 }
 0x146   :  { %1671 = vmatprep.subr.bf16.mxu0 %v1939_v61  ;;  %1693 = vmatprep.subr.bf16.mxu1 %v1940_v62 }
 0x149   :  { %1672 = vmatpush3.bf16.msra.mxu0 %v1941_v63  ;;  %1694 = vmatpush3.bf16.msra.mxu1 %v1942_v0 }
 0x14a   :  { %1673 = vmatprep.subr.bf16.mxu0 %v1943_v1  ;;  %1695 = vmatprep.subr.bf16.mxu1 %v1944_v2 }
 0x14d   :  { %1674 = vmatpush3.bf16.msra.mxu0 %v1945_v3  ;;  %1696 = vmatpush3.bf16.msra.mxu1 %v1946_v4 }
 0x14e   :  { %1675 = vmatprep.subr.bf16.mxu0 %v1947_v5  ;;  %1697 = vmatprep.subr.bf16.mxu1 %v1948_v6 }
 0x151   :  { %1676 = vmatpush3.bf16.msra.mxu0 %v1949_v7  ;;  %1698 = vmatpush3.bf16.msra.mxu1 %v1950_v8 }
 0x207   :  { %v1047_v19 = vpop.f32.mrb[4].mxu0  ;;  %v1129_v20 = vpop.f32.mrb[4].mxu1 }
 0x208   :  { %v1705_v21 = vadd.f32 %v1047_v19, %v315_v15  ;;  %v1707_v23 = vadd.f32 %v1129_v20, %v323_v16  ;;  %v1049_v24 = vpop.f32.mrb[5].mxu0  ;;  %v1131_v25 = vpop.f32.mrb[5].mxu1 }
 0x209   :  { %v1706_v27 = vadd.f32 %v1049_v24, %v319_v17  ;;  %v1708_v28 = vadd.f32 %v1131_v25, %v327_v18  ;;  %v1051_v29 = vpop.f32.mrb[6].mxu0  ;;  %v1133_v30 = vpop.f32.mrb[6].mxu1 }
 0x20a   :  { %v1136_v10 = vmax.f32 %v1705_v21, 0.0  ;;  %v1138_v31 = vmax.f32 %v1707_v23, 0.0  ;;  %v1052_v32 = vpop.f32.mrb[7].mxu0  ;;  %v1134_v26 = vpop.f32.mrb[7].mxu1 }
 0x20b   :  { %v1137_v33 = vmax.f32 %v1706_v27, 0.0  ;;  %v1139_v34 = vmax.f32 %v1708_v28, 0.0 }
 0x20c   :  { %v1140_v9 = vpack.c.bf16 %v1136_v10, %v1136_v10  ;;  %v1142_v13 = vpack.c.bf16 %v1138_v31, %v1138_v31 }
 0x20d   :  { %v1141_v12 = vpack.c.bf16 %v1137_v33, %v1137_v33  ;;  %v1143_v35 = vpack.c.bf16 %v1139_v34, %v1139_v34 }
 0x20f   :  { %1439 = vmatprep.mubr.bf16.mxu0 %v1141_v12  ;;  %1479 = vmatprep.mubr.bf16.mxu1 %v1143_v35 }
 0x210   :  { %1440 = vmatmul.mubr.bf16.vlgmr.msra.gmra.mrb[8].mxu0 %v1140_v9  ;;  %1480 = vmatmul.mubr.bf16.vlgmr.msra.gmra.mrb[8].mxu1 %v1142_v13 }
 0x2e3   :  { %v1677_v36 = vpop.f32.mrb[8].mxu0  ;;  %v1699_v37 = vpop.f32.mrb[8].mxu1 }
 0x2e4   :  { %v1678_v39 = vpop.f32.mrb[9].mxu0  ;;  %v1700_v40 = vpop.f32.mrb[9].mxu1 }
 0x2e5   :  { %v1679_v41 = vadd.f32 %v1678_v39, %v1677_v36  ;;  %v1701_v11 = vadd.f32 %v1700_v40, %v1699_v37  ;;  %v1680_v42 = vpop.f32.mrb[10].mxu0  ;;  %v1702_v22 = vpop.f32.mrb[10].mxu1 }
 0x2e6   :  { %v1681_v43 = vpop.f32.mrb[11].mxu0  ;;  %v1703_v44 = vpop.f32.mrb[11].mxu1 }
 0x2e7   :  { %v1442_v45 = vadd.f32 %v1679_v41, %v1628_v38 }
 0x2e9   :  { %v1482_v46 = vadd.f32 %v1701_v11, %v1442_v45 }
 0x2eb   :  { %1488 = vst.msk [vmem:[%s2192_s7] sm:$0xff] %vm1487_vm1, %v1482_v46 }
 0x2ec   :  { %1493 = vsyncpa [#allocation3], 1 }

</bundles_post_ra>
